<compile_context>
chip_gen: v6e
topology: v6e:2x2x1
jax: 0.10.0
libtpu: 0.0.40
codegen_flags: <defaults>
</compile_context>

<pallas_src>
import math

import jax
import jax.numpy as jnp
from jax.experimental import pallas as pl
from jax.experimental.pallas import tpu as pltpu

# nn.RMSNorm default eps=None -> torch.finfo(dtype).eps; matches f32 machine eps.
_RMS_EPS = float(jnp.finfo(jnp.float32).eps)
_GELU_C = math.sqrt(2.0 / math.pi)


# ----------------------------------------------------------------------------
# small math helpers (shared by kernels and reference)
# ----------------------------------------------------------------------------
def _gelu_tanh(x):
    # PyTorch F.gelu(x, approximate='tanh')
    return 0.5 * x * (1.0 + jnp.tanh(_GELU_C * (x + 0.044715 * x * x * x)))


def nearest_power_of_two(x: int, round_up: bool = False) -> int:
    return 1 << math.floor(math.log2(x)) if not round_up else 1 << math.ceil(math.log2(x))


def get_opt_degree(seq_len: int) -> int:
    return int(math.ceil(7 / 6 * math.log2(seq_len)))


def poly_mul_x(poly):
    return [0] + poly


def poly_scale(poly, factor):
    return [c * factor for c in poly]


def poly_sub(p1, p2):
    n = max(len(p1), len(p2))
    return [(p1[i] if i < len(p1) else 0) - (p2[i] if i < len(p2) else 0) for i in range(n)]


def chebyshev_coeff(n):
    if n == 0:
        return [1]
    if n == 1:
        return [0, 1]
    T_nm2, T_nm1 = [1], [0, 1]
    for _ in range(2, n + 1):
        T_n = poly_sub(poly_scale(poly_mul_x(T_nm1), 2), T_nm2)
        T_nm2, T_nm1 = T_nm1, T_n
    return T_n


def monic_chebyshev_coeff(n):
    c = chebyshev_coeff(n)
    lead = c[-1]
    return [v / lead for v in c]


# ----------------------------------------------------------------------------
# FFT convolutions (no Pallas FFT primitive -> plain XLA ops)
# ----------------------------------------------------------------------------
def fft_conv_jax(u, v, mode="same", causal=True):
    """u: (B, L, d); v: (F, d) or (F, d, k). Mirrors the PyTorch fft_conv."""
    B, L, d = u.shape
    if v.ndim == 2:
        v = v[:, :, None]
    F_len = v.shape[0]
    conv_len = L + F_len - 1
    fft_len = nearest_power_of_two(conv_len, round_up=True)
    u_p = jnp.pad(u.astype(jnp.float32), ((0, 0), (0, fft_len - L), (0, 0)))
    v_p = jnp.pad(v.astype(jnp.float32), ((0, fft_len - F_len), (0, 0), (0, 0)))
    U_fft = jnp.fft.rfft(u_p, n=fft_len, axis=1)[..., None]      # (B, Fr, d, 1)
    V_fft = jnp.fft.rfft(v_p, n=fft_len, axis=0)[None, ...]      # (1, Fr, d, k)
    conv = jnp.fft.irfft(U_fft * V_fft, n=fft_len, axis=1)
    start = F_len - 1 if causal else 0
    if mode == "full":
        end = start + conv_len
    elif mode == "same":
        end = start + L
    else:  # valid
        end = start + L - F_len + 1
    res = conv[:, start:end]
    if res.shape[-1] == 1:
        res = res[..., 0]
    return res.astype(u.dtype)


def stu_conv_jax(u, v, n):
    """Tensordot path of stu_conv. u: (B, L, r); v: (Lf, r)."""
    B, L, r = u.shape
    dtype = u.dtype
    sgn = jnp.ones((1, L, 1), dtype=jnp.float32)
    sgn = sgn.at[:, 1::2].multiply(-1.0)
    v4 = v.reshape(1, -1, v.shape[-1], 1).astype(jnp.float32)    # (1, Lf, r, 1)
    V = jnp.fft.rfft(v4, n=n, axis=1)
    U = jnp.stack([u, u * sgn], axis=-1).astype(jnp.float32)     # (B, L, r, 2)
    Uf = jnp.fft.rfft(U, n=n, axis=1)
    conv = jnp.fft.irfft(V * Uf, n=n, axis=1)[:, :L]
    U_plus, U_minus = conv[..., 0], conv[..., 1]
    U_minus = U_minus * sgn
    return U_plus.astype(dtype), U_minus.astype(dtype)


# ----------------------------------------------------------------------------
# VMEM budget & tile selection (generation-aware)
# ----------------------------------------------------------------------------
def _vmem_budget_bytes() -> int:
    cap = 64 * 1024 * 1024                      # conservative default (v7x per-TC)
    try:
        info = pltpu.get_tpu_info()
        cap = int(getattr(info, "vmem_capacity_bytes", cap))
    except Exception:
        pass
    return int(cap * 0.70)                      # ~70% of capacity, leaves headroom


def _pick_tm(M, bytes_per_row, budget, candidates=(1024, 512, 256, 128, 64, 32, 16, 8)):
    for tm in candidates:
        if tm <= M and M % tm == 0 and tm * bytes_per_row <= budget:
            return tm
    assert M % 8 == 0, f"token count {M} must be a multiple of 8"
    return 8


def _pick_mlp_tiles(M, dim, inter, r, budget):
    # Per-token-row VMEM cost: x in (2 buf, f32) + out (2 buf, f32) + xr scratch
    # (f32) + xn scratch (bf16) + z in (2 buf, f32).
    row_bytes = dim * (4 * 2 + 4 * 2 + 4 + 2) + r * 4 * 2
    tm = _pick_tm(M, row_bytes, budget // 3, candidates=(512, 256, 128, 64, 32, 16, 8))
    w_budget = budget - tm * row_bytes

    def w_bytes(tk):  # W1/W3/W2 tiles, bf16, assume double-buffered by the pipeline
        return 2 * 3 * dim * tk * 2

    if w_bytes(inter) <= w_budget:
        tk = inter                               # weights fully VMEM-resident
    else:
        tk = None
        for cand in (2048, 1024, 512, 256, 128):
            if cand < inter and inter % cand == 0 and w_bytes(cand) <= w_budget:
                tk = cand
                break
        if tk is None:
            assert inter % 128 == 0, f"inter={inter} must be a multiple of 128"
            tk = 128
        # Weights stream per token tile -> raise tm (if it fits) to amortize the
        # per-k weight DMA (raises per-weight-byte arithmetic intensity).
        for cand in (1024, 512):
            if cand > tm and cand <= M and M % cand == 0 and \
                    cand * row_bytes + w_bytes(tk) <= budget:
                tm = cand
                break
    return tm, tk


# ----------------------------------------------------------------------------
# Pallas kernel 1: RMSNorm (STU branch input) fused with u_proj = xn @ M_inputs
# ----------------------------------------------------------------------------
def _rmsnorm_proj_kernel(x_ref, g_ref, m_ref, xn_ref, up_ref):
    x = x_ref[...].astype(jnp.float32)
    ms = jnp.mean(x * x, axis=-1, keepdims=True)
    xn = x * jax.lax.rsqrt(ms + _RMS_EPS) * g_ref[...].astype(jnp.float32)
    xn_ref[...] = xn.astype(xn_ref.dtype)
    up_ref[...] = jnp.dot(xn, m_ref[...].astype(jnp.float32),
                          preferred_element_type=jnp.float32).astype(up_ref.dtype)


def rmsnorm_proj_pallas(x, gamma, m_inputs, *, tm=None):
    """x: (M, dim); gamma: (1, dim); m_inputs: (dim, r). Returns (xn, xn @ m_inputs)."""
    M, dim = x.shape
    r = m_inputs.shape[1]
    budget = _vmem_budget_bytes()
    if tm is None:
        # mem-bound streaming kernel: biggest token tile that fits the budget
        row_bytes = dim * 4 * 2 * 2 + r * 4 * 2
        tm = _pick_tm(M, row_bytes, budget)
    assert M % tm == 0 and tm % 8 == 0 and dim % 128 == 0

    return pl.pallas_call(
        _rmsnorm_proj_kernel,
        out_shape=(jax.ShapeDtypeStruct((M, dim), x.dtype),
                   jax.ShapeDtypeStruct((M, r), jnp.float32)),
        grid_spec=pltpu.PrefetchScalarGridSpec(
            num_scalar_prefetch=0,
            grid=(M // tm,),
            in_specs=[pl.BlockSpec((tm, dim), lambda i: (i, 0)),
                      pl.BlockSpec((1, dim), lambda i: (0, 0)),
                      pl.BlockSpec((dim, r), lambda i: (0, 0))],
            out_specs=[pl.BlockSpec((tm, dim), lambda i: (i, 0)),
                       pl.BlockSpec((tm, r), lambda i: (i, 0))],
        ),
        compiler_params=pltpu.CompilerParams(
            dimension_semantics=("parallel",),
            vmem_limit_bytes=budget,
        ),
    )(x, gamma, m_inputs)


# ----------------------------------------------------------------------------
# Pallas kernel 2: fused STU out-proj + residual + RMSNorm + gated MLP + residual
# ----------------------------------------------------------------------------
def _stu_mlp_kernel(x_ref, z_ref, wo_ref, bo_ref, g_ref,
                    w1_ref, b1_ref, w3_ref, b3_ref, w2_ref, b2_ref,
                    o_ref, xr_ref, xn_ref):
    k = pl.program_id(1)

    @pl.when(k == 0)
    def _init():
        # STU out-projection + residual: x' = x + z @ Wout + bout   (f32, r tiny)
        xr = (x_ref[...].astype(jnp.float32)
              + jnp.dot(z_ref[...].astype(jnp.float32),
                        wo_ref[...].astype(jnp.float32),
                        preferred_element_type=jnp.float32)
              + bo_ref[...])
        xr_ref[...] = xr
        # RMSNorm(x') in f32, cached as a bf16 MXU operand for all k steps.
        ms = jnp.mean(xr * xr, axis=-1, keepdims=True)
        xn = xr * jax.lax.rsqrt(ms + _RMS_EPS) * g_ref[...].astype(jnp.float32)
        xn_ref[...] = xn.astype(xn_ref.dtype)
        # f32 output block doubles as the accumulator (resident across k).
        o_ref[...] = (xr + b2_ref[...]).astype(o_ref.dtype)

    xn = xn_ref[...]
    # For this hidden tile the dim contraction is complete, so the nonlinearity +
    # gate apply per hidden tile; only the w2 contraction is split across k.
    h1 = jnp.dot(xn, w1_ref[...], preferred_element_type=jnp.float32) + b1_ref[...]
    h3 = jnp.dot(xn, w3_ref[...], preferred_element_type=jnp.float32) + b3_ref[...]
    g = _gelu_tanh(h1) * h3
    o_ref[...] += jnp.dot(g.astype(w2_ref.dtype), w2_ref[...],
                          preferred_element_type=jnp.float32).astype(o_ref.dtype)


def stu_mlp_block_pallas(x, z, out_w, out_b, gamma,
                         w1, b1, w2, b2, w3, b3, *, tm=None, tk=None):
    """x: (M, dim) f32; z: (M, r) f32; out_w: (r, dim) f32; biases f32 (1, out);
    w1/w3: (dim, inter) bf16; w2: (inter, dim) bf16. Returns x' + MLP(RMSNorm(x'))
    with x' = x + z @ out_w + out_b."""
    M, dim = x.shape
    r = z.shape[1]
    inter = w1.shape[1]
    assert x.dtype == jnp.float32, "f32 activations expected (output is the accumulator)"
    assert dim % 128 == 0

    budget = _vmem_budget_bytes()
    auto_tm, auto_tk = _pick_mlp_tiles(M, dim, inter, r, budget)
    tm = auto_tm if tm is None else min(tm, M)
    tk = auto_tk if tk is None else min(tk, inter)
    assert M % tm == 0 and inter % tk == 0 and tm % 8 == 0
    assert tk == inter or tk % 128 == 0

    cost = pl.CostEstimate(
        flops=2 * M * (r * dim + 3 * dim * inter),
        transcendentals=M * inter,
        bytes_accessed=(2 * M * dim * 4 + M * r * 4
                        + 3 * dim * inter * w1.dtype.itemsize
                        + (2 * inter + 3 * dim + r * dim) * 4),
    )

    return pl.pallas_call(
        _stu_mlp_kernel,
        out_shape=jax.ShapeDtypeStruct((M, dim), x.dtype),
        grid_spec=pltpu.PrefetchScalarGridSpec(
            num_scalar_prefetch=0,
            grid=(M // tm, inter // tk),
            in_specs=[
                pl.BlockSpec((tm, dim), lambda i, k: (i, 0)),   # x tile
                pl.BlockSpec((tm, r), lambda i, k: (i, 0)),     # z tile (STU branch)
                pl.BlockSpec((r, dim), lambda i, k: (0, 0)),    # out_proj weight
                pl.BlockSpec((1, dim), lambda i, k: (0, 0)),    # out_proj bias
                pl.BlockSpec((1, dim), lambda i, k: (0, 0)),    # mlp RMSNorm gamma
                pl.BlockSpec((dim, tk), lambda i, k: (0, k)),   # W1 tile
                pl.BlockSpec((1, tk), lambda i, k: (0, k)),     # b1 tile
                pl.BlockSpec((dim, tk), lambda i, k: (0, k)),   # W3 tile
                pl.BlockSpec((1, tk), lambda i, k: (0, k)),     # b3 tile
                pl.BlockSpec((tk, dim), lambda i, k: (k, 0)),   # W2 tile
                pl.BlockSpec((1, dim), lambda i, k: (0, 0)),    # b2
            ],
            out_specs=pl.BlockSpec((tm, dim), lambda i, k: (i, 0)),
            scratch_shapes=[
                pltpu.VMEM((tm, dim), jnp.float32),    # x' = x + stu_out (residual)
                pltpu.VMEM((tm, dim), jnp.bfloat16),   # cached RMSNorm(x')
            ],
        ),
        compiler_params=pltpu.CompilerParams(
            dimension_semantics=("parallel", "arbitrary"),
            vmem_limit_bytes=budget,
        ),
        cost_estimate=cost,
    )(x, z, out_w, out_b, gamma, w1, b1, w3, b3, w2, b2)


# ----------------------------------------------------------------------------
# Full STULayer forward (Pallas path)
# ----------------------------------------------------------------------------
def stu_layer_forward(x, p, *, tm=None, tk=None):
    B, L, D = x.shape
    M = B * L
    x2 = x.reshape(M, D)

    # ---- STU sub-layer prologue: RMSNorm + u_proj fused in one Pallas kernel ----
    xn2, u_proj2 = rmsnorm_proj_pallas(x2, p["stu_norm_g"], p["M_inputs"], tm=tm)
    xn = xn2.reshape(B, L, D)
    u_proj = u_proj2.reshape(B, L, -1)

    # FFT-based convolutions stay in XLA.
    p_conv = -fft_conv_jax(xn, p["p_coeffs_kernel"], mode="same", causal=True)
    p_proj = p_conv @ p["M_inputs"]                     # (B, L, r)
    phi_proj = p["stu_filters"] @ p["M_filters"]        # (L, r)
    sp, sm = stu_conv_jax(u_proj, phi_proj, p["n_fft"])
    z = (sp + sm + p_proj).reshape(M, -1)

    # ---- fused: x' = x + z@Wout + bout ; out = x' + MLP(RMSNorm(x')) ----
    out2 = stu_mlp_block_pallas(x2, z, p["out_w"], p["out_b"], p["mlp_norm_g"],
                                p["w1"], p["b1"], p["w2"], p["b2"], p["w3"], p["b3"],
                                tm=tm, tk=tk)
    return out2.reshape(B, L, D)


# ----------------------------------------------------------------------------
# Pure-JAX reference (mirrors the PyTorch module, f32 math)
# Precision contract: the Pallas path uses bf16 MXU operands for the MLP matmuls
# (f32 accumulation); accepted tolerance is 2e-2 relative to max |ref|.
# ----------------------------------------------------------------------------
def reference_stu_layer(x, p):
    def rms(v, g):
        ms = jnp.mean(v * v, axis=-1, keepdims=True)
        return v * jax.lax.rsqrt(ms + _RMS_EPS) * g

    xn = rms(x, p["stu_norm_g"])
    p_conv = -fft_conv_jax(xn, p["p_coeffs_kernel"], mode="same", causal=True)
    u_proj = xn @ p["M_inputs"]
    p_proj = p_conv @ p["M_inputs"]
    phi_proj = p["stu_filters"] @ p["M_filters"]
    sp, sm = stu_conv_jax(u_proj, phi_proj, p["n_fft"])
    stu_out = (sp + sm + p_proj) @ p["out_w"] + p["out_b"]
    x = x + stu_out

    xm = rms(x, p["mlp_norm_g"])
    w1 = p["w1"].astype(jnp.float32)
    w2 = p["w2"].astype(jnp.float32)
    w3 = p["w3"].astype(jnp.float32)
    h1 = _gelu_tanh(xm @ w1 + p["b1"])
    h3 = xm @ w3 + p["b3"]
    x = x + ((h1 * h3) @ w2 + p["b2"])
    return x


def init_linear(key, in_dim, out_dim, dtype=jnp.float32):
    # nn.Linear-style init: U(-1/sqrt(fan_in), 1/sqrt(fan_in)); weight stored (in, out).
    kw, kb = jax.random.split(key)
    bound = 1.0 / math.sqrt(in_dim)
    w = jax.random.uniform(kw, (in_dim, out_dim), dtype, -bound, bound)
    b = jax.random.uniform(kb, (1, out_dim), dtype, -bound, bound)
    return w, b


if __name__ == "__main__":
    # Small but lane-dense shapes (dim multiple of 128 so MXU/lane axes are full).
    dim = 128
    mlp_scale = 4
    inter_dim = mlp_scale * dim          # 512
    batch, seq_len = 2, 128              # M = 256 tokens
    num_eigh = 16                        # K
    r = 8                                # tensordot rank
    n_fft = nearest_power_of_two(seq_len * 2 - 1, round_up=True)

    key = jax.random.PRNGKey(0)
    ks = jax.random.split(key, 9)

    x = jax.random.normal(ks[0], (batch, seq_len, dim), jnp.float32)

    # STU branch parameters (f32).
    stu_filters = jax.random.normal(ks[1], (seq_len, num_eigh), jnp.float32) / math.sqrt(seq_len)
    M_inputs = jax.random.normal(ks[2], (dim, r), jnp.float32) / math.sqrt(dim)
    M_filters = jax.random.normal(ks[3], (num_eigh, r), jnp.float32) / math.sqrt(num_eigh)
    out_w, out_b = init_linear(ks[4], r, dim)
    deg = get_opt_degree(seq_len)
    p_coeffs = jnp.asarray(monic_chebyshev_coeff(deg), jnp.float32).reshape(-1, 1)
    p_coeffs_kernel = jnp.tile(p_coeffs, (1, dim))

    # MLP parameters: bf16 weights (MXU operands), f32 biases.
    w1f, b1 = init_linear(ks[5], dim, inter_dim)
    w2f, b2 = init_linear(ks[6], inter_dim, dim)
    w3f, b3 = init_linear(ks[7], dim, inter_dim)
    w1, w2, w3 = (w.astype(jnp.bfloat16) for w in (w1f, w2f, w3f))

    params = dict(
        stu_norm_g=jnp.ones((1, dim), jnp.float32),
        mlp_norm_g=jnp.ones((1, dim), jnp.float32),
        p_coeffs_kernel=p_coeffs_kernel,
        stu_filters=stu_filters,
        M_inputs=M_inputs,
        M_filters=M_filters,
        out_w=out_w,
        out_b=out_b,
        w1=w1, b1=b1, w2=w2, b2=b2, w3=w3, b3=b3,
        n_fft=n_fft,
    )

    out = stu_layer_forward(x, params)
    jax.block_until_ready(out)

    ref = reference_stu_layer(x, params)
    rel_err = float(jnp.max(jnp.abs(out - ref)) / (jnp.max(jnp.abs(ref)) + 1e-6))
    assert rel_err < 2e-2, f"mismatch vs reference: rel err {rel_err}"

    print("KERNEL_OK")
</pallas_src>

<mosaic_0001>
module attributes {stable_mosaic.version = 11 : i64} {
  func.func @_rmsnorm_proj_kernel(%arg0: i32, %arg1: memref<256x128xf32, #tpu.memory_space<vmem>>, %arg2: memref<1x128xf32, #tpu.memory_space<vmem>>, %arg3: memref<128x8xf32, #tpu.memory_space<vmem>>, %arg4: memref<256x128xf32, #tpu.memory_space<vmem>>, %arg5: memref<256x8xf32, #tpu.memory_space<vmem>>) attributes {dimension_semantics = [#tpu.dimension_semantics<parallel>], iteration_bounds = array<i64: 1>, scalar_prefetch = 0 : i64, scratch_operands = 0 : i64, tpu.core_type = #tpu.core_type<tc>, window_params = [{transform_indices = @transform_0, window_bounds = array<i64: 256, 128>}, {pipeline_mode = #tpu.pipeline_mode<synchronous>, transform_indices = @transform_1, window_bounds = array<i64: 1, 128>}, {pipeline_mode = #tpu.pipeline_mode<synchronous>, transform_indices = @transform_2, window_bounds = array<i64: 128, 8>}, {transform_indices = @transform_3, window_bounds = array<i64: 256, 128>}, {transform_indices = @transform_4, window_bounds = array<i64: 256, 8>}]} {
    %c0 = arith.constant 0 : index
    %c0_0 = arith.constant 0 : index
    %0 = vector.load %arg1[%c0, %c0_0] : memref<256x128xf32, #tpu.memory_space<vmem>>, vector<256x128xf32>
    %1 = arith.mulf %0, %0 : vector<256x128xf32>
    %cst = arith.constant dense<0.000000e+00> : vector<256xf32>
    %2 = vector.multi_reduction <add>, %1, %cst [1] : vector<256x128xf32> to vector<256xf32>
    %3 = vector.shape_cast %2 : vector<256xf32> to vector<256x1xf32>
    %cst_1 = arith.constant 1.280000e+02 : f32
    %4 = vector.broadcast %cst_1 : f32 to vector<256x1xf32>
    %5 = arith.divf %3, %4 : vector<256x1xf32>
    %cst_2 = arith.constant 1.1920929E-7 : f32
    %6 = vector.broadcast %cst_2 : f32 to vector<256x1xf32>
    %7 = arith.addf %5, %6 : vector<256x1xf32>
    %8 = math.rsqrt %7 : vector<256x1xf32>
    %9 = vector.broadcast %8 : vector<256x1xf32> to vector<256x128xf32>
    %10 = arith.mulf %0, %9 : vector<256x128xf32>
    %c0_3 = arith.constant 0 : index
    %c0_4 = arith.constant 0 : index
    %11 = vector.load %arg2[%c0_3, %c0_4] : memref<1x128xf32, #tpu.memory_space<vmem>>, vector<1x128xf32>
    %12 = vector.broadcast %11 : vector<1x128xf32> to vector<256x128xf32>
    %13 = arith.mulf %10, %12 : vector<256x128xf32>
    %c0_5 = arith.constant 0 : index
    %c0_6 = arith.constant 0 : index
    %14 = vector.load %arg4[%c0_5, %c0_6] : memref<256x128xf32, #tpu.memory_space<vmem>>, vector<256x128xf32>
    tpu.vector_store %arg4[%c0_5, %c0_6], %13 {strides = array<i32>} : memref<256x128xf32, #tpu.memory_space<vmem>>, vector<256x128xf32>,
    %c0_7 = arith.constant 0 : index
    %c0_8 = arith.constant 0 : index
    %15 = vector.load %arg3[%c0_7, %c0_8] : memref<128x8xf32, #tpu.memory_space<vmem>>, vector<128x8xf32>
    %cst_9 = arith.constant dense<0.000000e+00> : vector<256x8xf32>
    %16 = tpu.matmul %13, %15, %cst_9 {dimension_numbers = #tpu.dot_dimension_numbers<[1], [0], [0], [1], [0, 0, 1, 1], [], []>} : vector<256x128xf32>, vector<128x8xf32>, vector<256x8xf32> -> vector<256x8xf32>
    %c0_10 = arith.constant 0 : index
    %c0_11 = arith.constant 0 : index
    %17 = vector.load %arg5[%c0_10, %c0_11] : memref<256x8xf32, #tpu.memory_space<vmem>>, vector<256x8xf32>
    tpu.vector_store %arg5[%c0_10, %c0_11], %16 {strides = array<i32>} : memref<256x8xf32, #tpu.memory_space<vmem>>, vector<256x8xf32>,
    return
  }
  func.func @transform_0(%arg0: i32) -> (i32, i32) {
    %c0_i32 = arith.constant 0 : i32
    %c0_i32_0 = arith.constant 0 : i32
    return %arg0, %c0_i32 : i32, i32
  }
  func.func @transform_1(%arg0: i32) -> (i32, i32) {
    %c0_i32 = arith.constant 0 : i32
    %c0_i32_0 = arith.constant 0 : i32
    %c0_i32_1 = arith.constant 0 : i32
    return %c0_i32, %c0_i32_0 : i32, i32
  }
  func.func @transform_2(%arg0: i32) -> (i32, i32) {
    %c0_i32 = arith.constant 0 : i32
    %c0_i32_0 = arith.constant 0 : i32
    %c0_i32_1 = arith.constant 0 : i32
    return %c0_i32, %c0_i32_0 : i32, i32
  }
  func.func @transform_3(%arg0: i32) -> (i32, i32) {
    %c0_i32 = arith.constant 0 : i32
    %c0_i32_0 = arith.constant 0 : i32
    return %arg0, %c0_i32 : i32, i32
  }
  func.func @transform_4(%arg0: i32) -> (i32, i32) {
    %c0_i32 = arith.constant 0 : i32
    %c0_i32_0 = arith.constant 0 : i32
    return %arg0, %c0_i32 : i32, i32
  }
}

</mosaic_0001>

<bundles_post_ra>
// kernel: tpu_custom_call.1
= control target key start
LH: loop header
LB: loop body
LE: loop exit
PB: predicated region body
PF: predicated region fallthrough
CT: control target
= control target key end

     0   :  { %10 = vsyncpa [#allocation3], 0  ;;  %s1341_s0 = inlined_call_operand.hbm [shape: f32[256,128], index: 0, kind: input, shape index: {}]   ;;  %s1342_s1 = inlined_call_operand.vmem [shape: f32[1,128], index: 1, kind: input, shape index: {}]   ;;  %s1343_s2 = inlined_call_operand.vmem [shape: f32[128,8], index: 2, kind: input, shape index: {}]   ;;  %s1344_s3 = inlined_call_operand.hbm [shape: f32[256,128], index: 3, kind: output, shape index: {0}]   ;;  %s1345_s4 = inlined_call_operand.vmem [shape: f32[256,8], index: 4, kind: output, shape index: {1}]  }
   0x1   :  { %11 = vsyncpa [#allocation4], 0  ;;  %s927_s15 = smov [#allocation2]  }
   0x2   :  { %s17_s16 = sshll.u32 %s927_s15, 4  ;;  %s18_s16 = int_to_ptr.vmem [resolvable:$true] %s17_s16 }
   0x3   :  { %s891_s17 = scalar_lea.vmem %s18_s16, 4096  ;;  %p896_p1 = scmp.lt.s32.totalorder %s18_s16, %s18_s16 }
   0x4   :  { %p892_p0 = scmp.ne.s32.totalorder %s18_s16, %s891_s17  ;;  %p897_p2 = scmp.lt.s32.totalorder %s891_s17, %s891_s17 }
   0x6   :  { %p898_p3 = por %p897_p2, %p896_p1 }
   0x8   :  { %p899_p4 = pnand %p898_p3, %p892_p0 }
   0xa   :  { %902 = shalt.err (!%p899_p4)
}
   0xb   :  { %s928_s18 = smov 128   ;;  %s929_s19 = smov 8  }
   0xc   :  { %23 = dma.hbm_to_vmem [thread:$0]  %s1341_s0, 4096, %s18_s16, [#allocation3], %s928_s18, %s928_s18, %s929_s19  }
   0xd   :  { %923 = dma.done.wait [#allocation3], 4096  }
   0xe   :  { %924 = vsyncadd [#allocation3], 4294963200  ;;  %v962_v0 = vld [vmem:[#allocation2 + $0x8] sm:$0xff]  ;;  %v964_v1 = vld [vmem:[#allocation2] sm:$0xff] }
   0xf   :  { %v966_v2 = vld [vmem:[#allocation2 + $0x88] sm:$0xff]  ;;  %v64_v3 = vmul.f32 %v962_v0, %v962_v0  ;;  %v63_v4 = vmul.f32 %v964_v1, %v964_v1  ;;  %v972_v5 = vld [vmem:[#allocation2 + $0x80] sm:$0xff]  ;;  %v978_v8 = vld [vmem:[#allocation2 + $0x90] sm:$0xff] }
  0x10   :  { %v80_v6 = vmul.f32 %v966_v2, %v966_v2  ;;  %v79_v7 = vmul.f32 %v972_v5, %v972_v5  ;;  %v980_v9 = vld [vmem:[#allocation2 + $0x10] sm:$0xff]  ;;  %v81_v10 = vmul.f32 %v978_v8, %v978_v8  ;;  %v986_v12 = vld [vmem:[#allocation2 + $0x98] sm:$0xff]  ;;  %v1000_v18 = vld [vmem:[#allocation2 + $0xa0] sm:$0xff] }
  0x11   :  { %97 = vadd.xlane.f32.xlu1 %v64_v3  ;;  %95 = vadd.xlane.f32.xlu0 %v63_v4  ;;  %v65_v11 = vmul.f32 %v980_v9, %v980_v9  ;;  %v988_v13 = vld [vmem:[#allocation2 + $0x18] sm:$0xff]  ;;  %v82_v15 = vmul.f32 %v986_v12, %v986_v12  ;;  %v373_v17 = vld [vmem:[%s1343_s2 + $0x70] sm:$0xff]  ;;  %v1002_v19 = vld [vmem:[#allocation2 + $0x20] sm:$0xff]  ;;  %v83_v21 = vmul.f32 %v1000_v18, %v1000_v18 }
  0x12   :  { %v374_v14 = vld [vmem:[%s1343_s2 + $0x78] sm:$0xff]  ;;  %v66_v16 = vmul.f32 %v988_v13, %v988_v13  ;;  %v372_v20 = vld [vmem:[%s1343_s2 + $0x68] sm:$0xff]  ;;  %v67_v22 = vmul.f32 %v1002_v19, %v1002_v19  ;;  %v371_v25 = vld [vmem:[%s1343_s2 + $0x60] sm:$0xff] }
  0x13   :  { %703 = vmatprep.subr.mxu0 %v374_v14  ;;  %783 = vmatprep.subr.mxu1 %v374_v14  ;;  %v1011_v23 = vld [vmem:[#allocation2 + $0xa8] sm:$0xff]  ;;  %v370_v28 = vld [vmem:[%s1343_s2 + $0x58] sm:$0xff]  ;;  %v1025_v29 = vld [vmem:[#allocation2 + $0xb0] sm:$0xff] }
  0x14   :  { %704 = vmatpush3.msra.mxu0 %v374_v14  ;;  %799 = vmatpush3.msra.mxu1 %v374_v14  ;;  %v1013_v24 = vld [vmem:[#allocation2 + $0x28] sm:$0xff]  ;;  %v84_v26 = vmul.f32 %v1011_v23, %v1011_v23  ;;  %v1027_v30 = vld [vmem:[#allocation2 + $0x30] sm:$0xff]  ;;  %v85_v32 = vmul.f32 %v1025_v29, %v1025_v29  ;;  %v1036_v34 = vld [vmem:[#allocation2 + $0xb8] sm:$0xff] }
  0x15   :  { %129 = vadd.xlane.f32.xlu1 %v80_v6  ;;  %127 = vadd.xlane.f32.xlu0 %v79_v7  ;;  %v68_v27 = vmul.f32 %v1013_v24, %v1013_v24  ;;  %v369_v31 = vld [vmem:[%s1343_s2 + $0x50] sm:$0xff]  ;;  %v69_v33 = vmul.f32 %v1027_v30, %v1027_v30  ;;  %v1038_v35 = vld [vmem:[#allocation2 + $0x38] sm:$0xff]  ;;  %v368_v36 = vld [vmem:[%s1343_s2 + $0x48] sm:$0xff]  ;;  %v86_v37 = vmul.f32 %v1036_v34, %v1036_v34 }
  0x16   :  { %705 = vmatprep.subr.mxu0 %v373_v17  ;;  %784 = vmatprep.subr.mxu1 %v373_v17  ;;  %v70_v38 = vmul.f32 %v1038_v35, %v1038_v35  ;;  %v367_v39 = vld [vmem:[%s1343_s2 + $0x40] sm:$0xff]  ;;  %v366_v42 = vld [vmem:[%s1343_s2 + $0x38] sm:$0xff]  ;;  %v1061_v45 = vld [vmem:[#allocation2 + $0xc8] sm:$0xff] }
  0x17   :  { %706 = vmatpush3.msra.mxu0 %v373_v17  ;;  %800 = vmatpush3.msra.mxu1 %v373_v17  ;;  %v1050_v40 = vld [vmem:[#allocation2 + $0xc0] sm:$0xff]  ;;  %v1063_v46 = vld [vmem:[#allocation2 + $0x48] sm:$0xff]  ;;  %v365_v47 = vld [vmem:[%s1343_s2 + $0x30] sm:$0xff]  ;;  %v88_v48 = vmul.f32 %v1061_v45, %v1061_v45 }
  0x18   :  { %707 = vmatprep.subr.mxu0 %v372_v20  ;;  %785 = vmatprep.subr.mxu1 %v372_v20  ;;  %v1052_v41 = vld [vmem:[#allocation2 + $0x40] sm:$0xff]  ;;  %v87_v43 = vmul.f32 %v1050_v40, %v1050_v40  ;;  %v72_v49 = vmul.f32 %v1063_v46, %v1063_v46  ;;  %v364_v50 = vld [vmem:[%s1343_s2 + $0x28] sm:$0xff]  ;;  %v1075_v51 = vld [vmem:[#allocation2 + $0xd0] sm:$0xff] }
  0x19   :  { %131 = vadd.xlane.f32.xlu1 %v81_v10  ;;  %99 = vadd.xlane.f32.xlu0 %v65_v11  ;;  %v71_v44 = vmul.f32 %v1052_v41, %v1052_v41  ;;  %v1077_v52 = vld [vmem:[#allocation2 + $0x50] sm:$0xff]  ;;  %v363_v53 = vld [vmem:[%s1343_s2 + $0x20] sm:$0xff]  ;;  %v89_v54 = vmul.f32 %v1075_v51, %v1075_v51  ;;  %v1086_v56 = vld [vmem:[#allocation2 + $0xd8] sm:$0xff] }
  0x1a   :  { %708 = vmatpush3.msra.mxu0 %v372_v20  ;;  %801 = vmatpush3.msra.mxu1 %v372_v20  ;;  %v73_v55 = vmul.f32 %v1077_v52, %v1077_v52  ;;  %v1088_v57 = vld [vmem:[#allocation2 + $0x58] sm:$0xff]  ;;  %v90_v59 = vmul.f32 %v1086_v56, %v1086_v56  ;;  %v361_v61 = vld [vmem:[%s1343_s2 + $0x10] sm:$0xff]  ;;  %v1100_v62 = vld [vmem:[#allocation2 + $0xe0] sm:$0xff] }
  0x1b   :  { %709 = vmatprep.subr.mxu0 %v371_v25  ;;  %786 = vmatprep.subr.mxu1 %v371_v25  ;;  %v362_v58 = vld [vmem:[%s1343_s2 + $0x18] sm:$0xff]  ;;  %v74_v60 = vmul.f32 %v1088_v57, %v1088_v57  ;;  %v1102_v63 = vld [vmem:[#allocation2 + $0x60] sm:$0xff]  ;;  %v360_v3 = vld [vmem:[%s1343_s2 + $0x8] sm:$0xff]  ;;  %v91_v4 = vmul.f32 %v1100_v62, %v1100_v62 }
  0x1c   :  { %710 = vmatpush3.msra.mxu0 %v371_v25  ;;  %802 = vmatpush3.msra.mxu1 %v371_v25  ;;  %v75_v6 = vmul.f32 %v1102_v63, %v1102_v63  ;;  %v1111_v7 = vld [vmem:[#allocation2 + $0xe8] sm:$0xff]  ;;  %v359_v11 = vld [vmem:[%s1343_s2] sm:$0xff]  ;;  %v1124_v17 = vld [vmem:[#allocation2 + $0x70] sm:$0xff] }
  0x1d   :  { %133 = vadd.xlane.f32.xlu1 %v82_v15  ;;  %101 = vadd.xlane.f32.xlu0 %v66_v16  ;;  %v1113_v10 = vld [vmem:[#allocation2 + $0x68] sm:$0xff]  ;;  %v92_v14 = vmul.f32 %v1111_v7, %v1111_v7  ;;  %v1122_v16 = vld [vmem:[#allocation2 + $0xf0] sm:$0xff]  ;;  %v1132_v25 = vld [vmem:[#allocation2 + $0x78] sm:$0xff] }
  0x1e   :  { %711 = vmatprep.subr.mxu0 %v370_v28  ;;  %787 = vmatprep.subr.mxu1 %v370_v28  ;;  %v76_v15 = vmul.f32 %v1113_v10, %v1113_v10  ;;  %v93_v20 = vmul.f32 %v1122_v16, %v1122_v16 }
  0x1f   :  { %712 = vmatpush3.msra.mxu0 %v370_v28  ;;  %803 = vmatpush3.msra.mxu1 %v370_v28 }
  0x20   :  { %713 = vmatprep.subr.mxu0 %v369_v31  ;;  %788 = vmatprep.subr.mxu1 %v369_v31 }
  0x21   :  { %135 = vadd.xlane.f32.xlu1 %v83_v21  ;;  %103 = vadd.xlane.f32.xlu0 %v67_v22  ;;  %v77_v21 = vmul.f32 %v1124_v17, %v1124_v17  ;;  %v1130_v22 = vld [vmem:[#allocation2 + $0xf8] sm:$0xff] }
  0x22   :  { %714 = vmatpush3.msra.mxu0 %v369_v31  ;;  %804 = vmatpush3.msra.mxu1 %v369_v31 }
  0x23   :  { %715 = vmatprep.subr.mxu0 %v368_v36  ;;  %789 = vmatprep.subr.mxu1 %v368_v36 }
  0x24   :  { %716 = vmatpush3.msra.mxu0 %v368_v36  ;;  %805 = vmatpush3.msra.mxu1 %v368_v36 }
  0x25   :  { %137 = vadd.xlane.f32.xlu1 %v84_v26  ;;  %105 = vadd.xlane.f32.xlu0 %v68_v27  ;;  %v94_v26 = vmul.f32 %v1130_v22, %v1130_v22  ;;  %v78_v27 = vmul.f32 %v1132_v25, %v1132_v25 }
  0x26   :  { %717 = vmatprep.subr.mxu0 %v367_v39  ;;  %790 = vmatprep.subr.mxu1 %v367_v39 }
  0x27   :  { %718 = vmatpush3.msra.mxu0 %v367_v39  ;;  %806 = vmatpush3.msra.mxu1 %v367_v39 }
  0x28   :  { %719 = vmatprep.subr.mxu0 %v366_v42  ;;  %791 = vmatprep.subr.mxu1 %v366_v42 }
  0x29   :  { %139 = vadd.xlane.f32.xlu1 %v85_v32  ;;  %107 = vadd.xlane.f32.xlu0 %v69_v33 }
  0x2a   :  { %720 = vmatpush3.msra.mxu0 %v366_v42  ;;  %807 = vmatpush3.msra.mxu1 %v366_v42 }
  0x2b   :  { %721 = vmatprep.subr.mxu0 %v365_v47  ;;  %792 = vmatprep.subr.mxu1 %v365_v47 }
  0x2c   :  { %722 = vmatpush3.msra.mxu0 %v365_v47  ;;  %808 = vmatpush3.msra.mxu1 %v365_v47 }
  0x2d   :  { %141 = vadd.xlane.f32.xlu1 %v86_v37  ;;  %109 = vadd.xlane.f32.xlu0 %v70_v38 }
  0x2e   :  { %723 = vmatprep.subr.mxu0 %v364_v50  ;;  %793 = vmatprep.subr.mxu1 %v364_v50 }
  0x2f   :  { %724 = vmatpush3.msra.mxu0 %v364_v50  ;;  %809 = vmatpush3.msra.mxu1 %v364_v50 }
  0x30   :  { %725 = vmatprep.subr.mxu0 %v363_v53  ;;  %794 = vmatprep.subr.mxu1 %v363_v53 }
  0x31   :  { %143 = vadd.xlane.f32.xlu1 %v87_v43  ;;  %111 = vadd.xlane.f32.xlu0 %v71_v44 }
  0x32   :  { %726 = vmatpush3.msra.mxu0 %v363_v53  ;;  %810 = vmatpush3.msra.mxu1 %v363_v53 }
  0x33   :  { %727 = vmatprep.subr.mxu0 %v362_v58  ;;  %795 = vmatprep.subr.mxu1 %v362_v58 }
  0x34   :  { %728 = vmatpush3.msra.mxu0 %v362_v58  ;;  %811 = vmatpush3.msra.mxu1 %v362_v58 }
  0x35   :  { %145 = vadd.xlane.f32.xlu1 %v88_v48  ;;  %113 = vadd.xlane.f32.xlu0 %v72_v49 }
  0x36   :  { %729 = vmatprep.subr.mxu0 %v361_v61  ;;  %796 = vmatprep.subr.mxu1 %v361_v61 }
  0x37   :  { %730 = vmatpush3.msra.mxu0 %v361_v61  ;;  %812 = vmatpush3.msra.mxu1 %v361_v61 }
  0x38   :  { %731 = vmatprep.subr.mxu0 %v360_v3  ;;  %797 = vmatprep.subr.mxu1 %v360_v3 }
  0x39   :  { %147 = vadd.xlane.f32.xlu1 %v89_v54  ;;  %115 = vadd.xlane.f32.xlu0 %v73_v55 }
  0x3a   :  { %732 = vmatpush3.msra.mxu0 %v360_v3  ;;  %813 = vmatpush3.msra.mxu1 %v360_v3 }
  0x3b   :  { %733 = vmatprep.subr.mxu0 %v359_v11  ;;  %798 = vmatprep.subr.mxu1 %v359_v11 }
  0x3c   :  { %734 = vmatpush3.msra.mxu0 %v359_v11  ;;  %814 = vmatpush3.msra.mxu1 %v359_v11 }
  0x3d   :  { %149 = vadd.xlane.f32.xlu1 %v90_v59  ;;  %117 = vadd.xlane.f32.xlu0 %v74_v60 }
  0x41   :  { %151 = vadd.xlane.f32.xlu1 %v91_v4  ;;  %119 = vadd.xlane.f32.xlu0 %v75_v6 }
  0x45   :  { %153 = vadd.xlane.f32.xlu1 %v92_v14  ;;  %121 = vadd.xlane.f32.xlu0 %v76_v15 }
  0x49   :  { %155 = vadd.xlane.f32.xlu1 %v93_v20  ;;  %123 = vadd.xlane.f32.xlu0 %v77_v21  ;;  %v1141_v21 = vld [vmem:[%s1342_s1] ss:$0 sm:$0xff]  ;;  %s930_s1 = smov [#allocation5]  }
  0x4a   :  { %s638_s29 = sshll.u32 %s930_s1, 4  ;;  %s639_s29 = int_to_ptr.vmem [resolvable:$true] %s638_s29 }
  0x4b   :  { %s903_s30 = scalar_lea.vmem %s639_s29, 4096  ;;  %p908_p6 = scmp.lt.s32.totalorder %s639_s29, %s639_s29 }
  0x4c   :  { %p904_p5 = scmp.ne.s32.totalorder %s639_s29, %s903_s30  ;;  %p909_p7 = scmp.lt.s32.totalorder %s903_s30, %s903_s30 }
  0x4d   :  { %157 = vadd.xlane.f32.xlu1 %v94_v26  ;;  %125 = vadd.xlane.f32.xlu0 %v78_v27 }
  0x4e   :  { %p910_p8 = por %p909_p7, %p908_p6 }
  0x50   :  { %p911_p9 = pnand %p910_p8, %p904_p5 }
  0x9a   :  { %v98_v28 = vpop.xlane.xlu1 %97  ;;  %v96_v31 = vpop.xlane.xlu0 %95 }
  0x9b   :  { %v161_v32 = vmul.f32 0.0078125, %v98_v28  ;;  %v160_v33 = vmul.f32 0.0078125, %v96_v31 }
  0x9d   :  { %v193_v36 = vadd.f32 1.1920929e-07, %v161_v32  ;;  %v192_v37 = vadd.f32 1.1920929e-07, %v160_v33 }
  0x9e   :  { %v130_v38 = vpop.xlane.xlu1 %129  ;;  %v128_v39 = vpop.xlane.xlu0 %127 }
  0x9f   :  { %819 = vrsqrt.f32 %v193_v36  ;;  %v177_v42 = vmul.f32 0.0078125, %v130_v38  ;;  %v176_v43 = vmul.f32 0.0078125, %v128_v39 }
  0xa0   :  { %821 = vrsqrt.f32 %v192_v37 }
  0xa1   :  { %v209_v44 = vadd.f32 1.1920929e-07, %v177_v42  ;;  %v208_v47 = vadd.f32 1.1920929e-07, %v176_v43 }
  0xa2   :  { %v132_v48 = vpop.xlane.xlu1 %131  ;;  %v100_v49 = vpop.xlane.xlu0 %99 }
  0xa3   :  { %823 = vrsqrt.f32 %v209_v44  ;;  %v178_v50 = vmul.f32 0.0078125, %v132_v48  ;;  %v162_v53 = vmul.f32 0.0078125, %v100_v49 }
  0xa4   :  { %825 = vrsqrt.f32 %v208_v47 }
  0xa5   :  { %v210_v54 = vadd.f32 1.1920929e-07, %v178_v50  ;;  %v194_v55 = vadd.f32 1.1920929e-07, %v162_v53 }
  0xa6   :  { %v134_v58 = vpop.xlane.xlu1 %133  ;;  %v102_v59 = vpop.xlane.xlu0 %101 }
  0xa7   :  { %827 = vrsqrt.f32 %v210_v54  ;;  %v179_v60 = vmul.f32 0.0078125, %v134_v58  ;;  %v163_v61 = vmul.f32 0.0078125, %v102_v59 }
  0xa8   :  { %829 = vrsqrt.f32 %v194_v55 }
  0xa9   :  { %v211_v3 = vadd.f32 1.1920929e-07, %v179_v60  ;;  %v195_v4 = vadd.f32 1.1920929e-07, %v163_v61 }
  0xaa   :  { %v136_v6 = vpop.xlane.xlu1 %135  ;;  %v104_v11 = vpop.xlane.xlu0 %103 }
  0xab   :  { %831 = vrsqrt.f32 %v211_v3  ;;  %v180_v14 = vmul.f32 0.0078125, %v136_v6  ;;  %v164_v15 = vmul.f32 0.0078125, %v104_v11 }
  0xac   :  { %v820_v20 = vpop.eup %819  ;;  %833 = vrsqrt.f32 %v195_v4 }
  0xad   :  { %v822_v26 = vpop.eup %821  ;;  %v212_v27 = vadd.f32 1.1920929e-07, %v180_v14  ;;  %v196_v28 = vadd.f32 1.1920929e-07, %v164_v15  ;;  %v257_v31 = vmul.f32 %v820_v20, %v962_v0 }
  0xae   :  { %v138_v32 = vpop.xlane.xlu1 %137  ;;  %v106_v33 = vpop.xlane.xlu0 %105  ;;  %v256_v36 = vmul.f32 %v822_v26, %v964_v1 }
  0xaf   :  { %835 = vrsqrt.f32 %v212_v27  ;;  %v181_v37 = vmul.f32 0.0078125, %v138_v32  ;;  %v165_v38 = vmul.f32 0.0078125, %v106_v33  ;;  %v296_v39 = vmul.f32 %v1141_v21, %v257_v31 }
  0xb0   :  { %v824_v42 = vpop.eup %823  ;;  %837 = vrsqrt.f32 %v196_v28  ;;  %v295_v43 = vmul.f32 %v1141_v21, %v256_v36 }
  0xb1   :  { %v826_v44 = vpop.eup %825  ;;  %v213_v47 = vadd.f32 1.1920929e-07, %v181_v37  ;;  %v197_v48 = vadd.f32 1.1920929e-07, %v165_v38  ;;  %328 = vst [vmem:[#allocation5 + $0x8] sm:$0xff] %v296_v39  ;;  %v273_v49 = vmul.f32 %v824_v42, %v966_v2 }
  0xb2   :  { %327 = vst [vmem:[#allocation5] sm:$0xff] %v295_v43  ;;  %735 = vmatprep.mubr.f32.mxu0 %v295_v43  ;;  %v140_v0 = vpop.xlane.xlu1 %139  ;;  %v108_v50 = vpop.xlane.xlu0 %107  ;;  %v272_v1 = vmul.f32 %v826_v44, %v972_v5 }
  0xb3   :  { %839 = vrsqrt.f32 %v213_v47  ;;  %v182_v53 = vmul.f32 0.0078125, %v140_v0  ;;  %736 = vmatmul.mubr.f32.vlgmr.msra.gmra.mxu0 %v296_v39  ;;  %v166_v54 = vmul.f32 0.0078125, %v108_v50  ;;  %v312_v55 = vmul.f32 %v1141_v21, %v273_v49 }
  0xb4   :  { %v828_v58 = vpop.eup %827  ;;  %841 = vrsqrt.f32 %v197_v48  ;;  %v311_v59 = vmul.f32 %v1141_v21, %v272_v1 }
  0xb5   :  { %v830_v60 = vpop.eup %829  ;;  %v214_v61 = vadd.f32 1.1920929e-07, %v182_v53  ;;  %v198_v3 = vadd.f32 1.1920929e-07, %v166_v54  ;;  %344 = vst [vmem:[#allocation5 + $0x88] sm:$0xff] %v312_v55  ;;  %v274_v2 = vmul.f32 %v828_v58, %v978_v8 }
  0xb6   :  { %343 = vst [vmem:[#allocation5 + $0x80] sm:$0xff] %v311_v59  ;;  %759 = vmatprep.mubr.f32.mxu1 %v311_v59  ;;  %v142_v4 = vpop.xlane.xlu1 %141  ;;  %v110_v5 = vpop.xlane.xlu0 %109  ;;  %v258_v6 = vmul.f32 %v830_v60, %v980_v9 }
  0xb7   :  { %843 = vrsqrt.f32 %v214_v61  ;;  %v183_v11 = vmul.f32 0.0078125, %v142_v4  ;;  %760 = vmatmul.mubr.f32.vlgmr.msra.gmra.mxu1 %v312_v55  ;;  %v167_v14 = vmul.f32 0.0078125, %v110_v5  ;;  %v313_v15 = vmul.f32 %v1141_v21, %v274_v2 }
  0xb8   :  { %v832_v20 = vpop.eup %831  ;;  %845 = vrsqrt.f32 %v198_v3  ;;  %v297_v26 = vmul.f32 %v1141_v21, %v258_v6 }
  0xb9   :  { %v834_v27 = vpop.eup %833  ;;  %v215_v28 = vadd.f32 1.1920929e-07, %v183_v11  ;;  %v199_v31 = vadd.f32 1.1920929e-07, %v167_v14  ;;  %345 = vst [vmem:[#allocation5 + $0x90] sm:$0xff] %v313_v15  ;;  %762 = vmatprep.mubr.f32.mxu1 %v313_v15  ;;  %v275_v8 = vmul.f32 %v832_v20, %v986_v12 }
  0xba   :  { %329 = vst [vmem:[#allocation5 + $0x10] sm:$0xff] %v297_v26  ;;  %738 = vmatprep.mubr.f32.mxu0 %v297_v26  ;;  %v144_v9 = vpop.xlane.xlu1 %143  ;;  %v112_v32 = vpop.xlane.xlu0 %111  ;;  %v259_v33 = vmul.f32 %v834_v27, %v988_v13 }
  0xbb   :  { %847 = vrsqrt.f32 %v215_v28  ;;  %v184_v36 = vmul.f32 0.0078125, %v144_v9  ;;  %v168_v37 = vmul.f32 0.0078125, %v112_v32  ;;  %v314_v38 = vmul.f32 %v1141_v21, %v275_v8 }
  0xbc   :  { %v836_v39 = vpop.eup %835  ;;  %849 = vrsqrt.f32 %v199_v31  ;;  %v298_v42 = vmul.f32 %v1141_v21, %v259_v33 }
  0xbd   :  { %v838_v43 = vpop.eup %837  ;;  %v216_v44 = vadd.f32 1.1920929e-07, %v184_v36  ;;  %v200_v47 = vadd.f32 1.1920929e-07, %v168_v37  ;;  %346 = vst [vmem:[#allocation5 + $0x98] sm:$0xff] %v314_v38  ;;  %763 = vmatmul.mubr.f32.gmra.mxu1 %v314_v38  ;;  %v276_v12 = vmul.f32 %v836_v39, %v1000_v18 }
  0xbe   :  { %330 = vst [vmem:[#allocation5 + $0x18] sm:$0xff] %v298_v42  ;;  %739 = vmatmul.mubr.f32.gmra.mxu0 %v298_v42  ;;  %v146_v48 = vpop.xlane.xlu1 %145  ;;  %v114_v13 = vpop.xlane.xlu0 %113  ;;  %v260_v49 = vmul.f32 %v838_v43, %v1002_v19 }
  0xbf   :  { %851 = vrsqrt.f32 %v216_v44  ;;  %v185_v0 = vmul.f32 0.0078125, %v146_v48  ;;  %v169_v50 = vmul.f32 0.0078125, %v114_v13  ;;  %v315_v1 = vmul.f32 %v1141_v21, %v276_v12 }
  0xc0   :  { %v840_v53 = vpop.eup %839  ;;  %853 = vrsqrt.f32 %v200_v47  ;;  %v299_v54 = vmul.f32 %v1141_v21, %v260_v49 }
  0xc1   :  { %v842_v55 = vpop.eup %841  ;;  %v217_v58 = vadd.f32 1.1920929e-07, %v185_v0  ;;  %v201_v59 = vadd.f32 1.1920929e-07, %v169_v50  ;;  %347 = vst [vmem:[#allocation5 + $0xa0] sm:$0xff] %v315_v1  ;;  %765 = vmatprep.mubr.f32.mxu1 %v315_v1  ;;  %v277_v18 = vmul.f32 %v840_v53, %v1011_v23 }
  0xc2   :  { %331 = vst [vmem:[#allocation5 + $0x20] sm:$0xff] %v299_v54  ;;  %741 = vmatprep.mubr.f32.mxu0 %v299_v54  ;;  %v148_v60 = vpop.xlane.xlu1 %147  ;;  %v116_v19 = vpop.xlane.xlu0 %115  ;;  %v261_v61 = vmul.f32 %v842_v55, %v1013_v24 }
  0xc3   :  { %855 = vrsqrt.f32 %v217_v58  ;;  %v186_v3 = vmul.f32 0.0078125, %v148_v60  ;;  %v170_v2 = vmul.f32 0.0078125, %v116_v19  ;;  %v316_v4 = vmul.f32 %v1141_v21, %v277_v18 }
  0xc4   :  { %v844_v5 = vpop.eup %843  ;;  %857 = vrsqrt.f32 %v201_v59  ;;  %v300_v6 = vmul.f32 %v1141_v21, %v261_v61 }
  0xc5   :  { %v846_v11 = vpop.eup %845  ;;  %v218_v14 = vadd.f32 1.1920929e-07, %v186_v3  ;;  %v202_v15 = vadd.f32 1.1920929e-07, %v170_v2  ;;  %348 = vst [vmem:[#allocation5 + $0xa8] sm:$0xff] %v316_v4  ;;  %766 = vmatmul.mubr.f32.gmra.mxu1 %v316_v4  ;;  %v278_v23 = vmul.f32 %v844_v5, %v1025_v29 }
  0xc6   :  { %332 = vst [vmem:[#allocation5 + $0x28] sm:$0xff] %v300_v6  ;;  %742 = vmatmul.mubr.f32.gmra.mxu0 %v300_v6  ;;  %v150_v20 = vpop.xlane.xlu1 %149  ;;  %v118_v24 = vpop.xlane.xlu0 %117  ;;  %v262_v26 = vmul.f32 %v846_v11, %v1027_v30 }
  0xc7   :  { %859 = vrsqrt.f32 %v218_v14  ;;  %v187_v27 = vmul.f32 0.0078125, %v150_v20  ;;  %v171_v28 = vmul.f32 0.0078125, %v118_v24  ;;  %v317_v31 = vmul.f32 %v1141_v21, %v278_v23 }
  0xc8   :  { %v848_v8 = vpop.eup %847  ;;  %861 = vrsqrt.f32 %v202_v15  ;;  %v301_v9 = vmul.f32 %v1141_v21, %v262_v26 }
  0xc9   :  { %v850_v32 = vpop.eup %849  ;;  %v219_v33 = vadd.f32 1.1920929e-07, %v187_v27  ;;  %v203_v36 = vadd.f32 1.1920929e-07, %v171_v28  ;;  %349 = vst [vmem:[#allocation5 + $0xb0] sm:$0xff] %v317_v31  ;;  %768 = vmatprep.mubr.f32.mxu1 %v317_v31  ;;  %v279_v29 = vmul.f32 %v848_v8, %v1036_v34 }
  0xca   :  { %333 = vst [vmem:[#allocation5 + $0x30] sm:$0xff] %v301_v9  ;;  %744 = vmatprep.mubr.f32.mxu0 %v301_v9  ;;  %v152_v37 = vpop.xlane.xlu1 %151  ;;  %v120_v30 = vpop.xlane.xlu0 %119  ;;  %v263_v38 = vmul.f32 %v850_v32, %v1038_v35 }
  0xcb   :  { %863 = vrsqrt.f32 %v219_v33  ;;  %v188_v39 = vmul.f32 0.0078125, %v152_v37  ;;  %v172_v42 = vmul.f32 0.0078125, %v120_v30  ;;  %v318_v43 = vmul.f32 %v1141_v21, %v279_v29 }
  0xcc   :  { %v852_v44 = vpop.eup %851  ;;  %865 = vrsqrt.f32 %v203_v36  ;;  %v302_v47 = vmul.f32 %v1141_v21, %v263_v38 }
  0xcd   :  { %v854_v12 = vpop.eup %853  ;;  %v220_v48 = vadd.f32 1.1920929e-07, %v188_v39  ;;  %v204_v13 = vadd.f32 1.1920929e-07, %v172_v42  ;;  %350 = vst [vmem:[#allocation5 + $0xb8] sm:$0xff] %v318_v43  ;;  %769 = vmatmul.mubr.f32.gmra.mxu1 %v318_v43  ;;  %v280_v34 = vmul.f32 %v852_v44, %v1050_v40 }
  0xce   :  { %334 = vst [vmem:[#allocation5 + $0x38] sm:$0xff] %v302_v47  ;;  %745 = vmatmul.mubr.f32.gmra.mxu0 %v302_v47  ;;  %v154_v49 = vpop.xlane.xlu1 %153  ;;  %v122_v35 = vpop.xlane.xlu0 %121  ;;  %v264_v0 = vmul.f32 %v854_v12, %v1052_v41 }
  0xcf   :  { %867 = vrsqrt.f32 %v220_v48  ;;  %v189_v50 = vmul.f32 0.0078125, %v154_v49  ;;  %v173_v1 = vmul.f32 0.0078125, %v122_v35  ;;  %v319_v53 = vmul.f32 %v1141_v21, %v280_v34 }
  0xd0   :  { %v856_v54 = vpop.eup %855  ;;  %869 = vrsqrt.f32 %v204_v13  ;;  %v303_v55 = vmul.f32 %v1141_v21, %v264_v0 }
  0xd1   :  { %v858_v58 = vpop.eup %857  ;;  %v221_v59 = vadd.f32 1.1920929e-07, %v189_v50  ;;  %v205_v18 = vadd.f32 1.1920929e-07, %v173_v1  ;;  %351 = vst [vmem:[#allocation5 + $0xc0] sm:$0xff] %v319_v53  ;;  %771 = vmatprep.mubr.f32.mxu1 %v319_v53  ;;  %v281_v40 = vmul.f32 %v856_v54, %v1061_v45 }
  0xd2   :  { %335 = vst [vmem:[#allocation5 + $0x40] sm:$0xff] %v303_v55  ;;  %747 = vmatprep.mubr.f32.mxu0 %v303_v55  ;;  %v156_v60 = vpop.xlane.xlu1 %155  ;;  %v124_v41 = vpop.xlane.xlu0 %123  ;;  %v265_v19 = vmul.f32 %v858_v58, %v1063_v46 }
  0xd3   :  { %871 = vrsqrt.f32 %v221_v59  ;;  %v190_v61 = vmul.f32 0.0078125, %v156_v60  ;;  %v174_v3 = vmul.f32 0.0078125, %v124_v41  ;;  %v320_v2 = vmul.f32 %v1141_v21, %v281_v40 }
  0xd4   :  { %v860_v4 = vpop.eup %859  ;;  %873 = vrsqrt.f32 %v205_v18  ;;  %v304_v5 = vmul.f32 %v1141_v21, %v265_v19 }
  0xd5   :  { %v862_v6 = vpop.eup %861  ;;  %v222_v11 = vadd.f32 1.1920929e-07, %v190_v61  ;;  %v206_v14 = vadd.f32 1.1920929e-07, %v174_v3  ;;  %352 = vst [vmem:[#allocation5 + $0xc8] sm:$0xff] %v320_v2  ;;  %772 = vmatmul.mubr.f32.gmra.mxu1 %v320_v2  ;;  %v282_v45 = vmul.f32 %v860_v4, %v1075_v51 }
  0xd6   :  { %336 = vst [vmem:[#allocation5 + $0x48] sm:$0xff] %v304_v5  ;;  %748 = vmatmul.mubr.f32.gmra.mxu0 %v304_v5  ;;  %v158_v15 = vpop.xlane.xlu1 %157  ;;  %v126_v46 = vpop.xlane.xlu0 %125  ;;  %v266_v23 = vmul.f32 %v862_v6, %v1077_v52 }
  0xd7   :  { %875 = vrsqrt.f32 %v222_v11  ;;  %v191_v20 = vmul.f32 0.0078125, %v158_v15  ;;  %v175_v24 = vmul.f32 0.0078125, %v126_v46  ;;  %v321_v26 = vmul.f32 %v1141_v21, %v282_v45 }
  0xd8   :  { %v864_v27 = vpop.eup %863  ;;  %877 = vrsqrt.f32 %v206_v14  ;;  %v305_v28 = vmul.f32 %v1141_v21, %v266_v23 }
  0xd9   :  { %v866_v31 = vpop.eup %865  ;;  %v223_v8 = vadd.f32 1.1920929e-07, %v191_v20  ;;  %v207_v9 = vadd.f32 1.1920929e-07, %v175_v24  ;;  %353 = vst [vmem:[#allocation5 + $0xd0] sm:$0xff] %v321_v26  ;;  %774 = vmatprep.mubr.f32.mxu1 %v321_v26  ;;  %v283_v51 = vmul.f32 %v864_v27, %v1086_v56 }
  0xda   :  { %337 = vst [vmem:[#allocation5 + $0x50] sm:$0xff] %v305_v28  ;;  %750 = vmatprep.mubr.f32.mxu0 %v305_v28  ;;  %v267_v52 = vmul.f32 %v866_v31, %v1088_v57 }
  0xdb   :  { %879 = vrsqrt.f32 %v223_v8  ;;  %v322_v32 = vmul.f32 %v1141_v21, %v283_v51 }
  0xdc   :  { %v868_v33 = vpop.eup %867  ;;  %881 = vrsqrt.f32 %v207_v9  ;;  %v306_v36 = vmul.f32 %v1141_v21, %v267_v52 }
  0xdd   :  { %v870_v29 = vpop.eup %869  ;;  %354 = vst [vmem:[#allocation5 + $0xd8] sm:$0xff] %v322_v32  ;;  %775 = vmatmul.mubr.f32.gmra.mxu1 %v322_v32  ;;  %v284_v37 = vmul.f32 %v868_v33, %v1100_v62 }
  0xde   :  { %338 = vst [vmem:[#allocation5 + $0x58] sm:$0xff] %v306_v36  ;;  %751 = vmatmul.mubr.f32.gmra.mxu0 %v306_v36  ;;  %v268_v56 = vmul.f32 %v870_v29, %v1102_v63 }
  0xdf   :  { %v323_v30 = vmul.f32 %v1141_v21, %v284_v37 }
  0xe0   :  { %v872_v38 = vpop.eup %871  ;;  %v307_v57 = vmul.f32 %v1141_v21, %v268_v56 }
  0xe1   :  { %v874_v39 = vpop.eup %873  ;;  %355 = vst [vmem:[#allocation5 + $0xe0] sm:$0xff] %v323_v30  ;;  %777 = vmatprep.mubr.f32.mxu1 %v323_v30  ;;  %v285_v42 = vmul.f32 %v872_v38, %v1111_v7 }
  0xe2   :  { %339 = vst [vmem:[#allocation5 + $0x60] sm:$0xff] %v307_v57  ;;  %753 = vmatprep.mubr.f32.mxu0 %v307_v57  ;;  %v269_v43 = vmul.f32 %v874_v39, %v1113_v10 }
  0xe3   :  { %v324_v62 = vmul.f32 %v1141_v21, %v285_v42 }
  0xe4   :  { %v876_v44 = vpop.eup %875  ;;  %v308_v47 = vmul.f32 %v1141_v21, %v269_v43 }
  0xe5   :  { %v878_v63 = vpop.eup %877  ;;  %356 = vst [vmem:[#allocation5 + $0xe8] sm:$0xff] %v324_v62  ;;  %778 = vmatmul.mubr.f32.gmra.mxu1 %v324_v62  ;;  %v286_v12 = vmul.f32 %v876_v44, %v1122_v16 }
  0xe6   :  { %340 = vst [vmem:[#allocation5 + $0x68] sm:$0xff] %v308_v47  ;;  %754 = vmatmul.mubr.f32.gmra.mxu0 %v308_v47  ;;  %v270_v48 = vmul.f32 %v878_v63, %v1124_v17 }
  0xe7   :  { %v325_v7 = vmul.f32 %v1141_v21, %v286_v12 }
  0xe8   :  { %v880_v13 = vpop.eup %879  ;;  %v309_v34 = vmul.f32 %v1141_v21, %v270_v48 }
  0xe9   :  { %v882_v10 = vpop.eup %881  ;;  %357 = vst [vmem:[#allocation5 + $0xf0] sm:$0xff] %v325_v7  ;;  %780 = vmatprep.mubr.f32.mxu1 %v325_v7  ;;  %v287_v49 = vmul.f32 %v880_v13, %v1130_v22 }
  0xea   :  { %341 = vst [vmem:[#allocation5 + $0x70] sm:$0xff] %v309_v34  ;;  %756 = vmatprep.mubr.f32.mxu0 %v309_v34  ;;  %v271_v35 = vmul.f32 %v882_v10, %v1132_v25 }
  0xeb   :  { %v326_v16 = vmul.f32 %v1141_v21, %v287_v49 }
  0xec   :  { %v310_v0 = vmul.f32 %v1141_v21, %v271_v35 }
  0xed   :  { %358 = vst [vmem:[#allocation5 + $0xf8] sm:$0xff] %v326_v16  ;;  %781 = vmatmul.mubr.f32.gmra.mxu1 %v326_v16 }
  0xee   :  { %342 = vst [vmem:[#allocation5 + $0x78] sm:$0xff] %v310_v0  ;;  %757 = vmatmul.mubr.f32.gmra.mxu0 %v310_v0 }
  0xef   :  { %914 = shalt.err (!%p911_p9)
}
  0xf0   :  { %644 = dma.vmem_to_hbm [thread:$0]  %s639_s29, 4096, %s1344_s3, [#allocation4], %s928_s18, %s928_s18, %s929_s19   ;;  %vm600_vm0 = vcmask 64512  }
 0x173   :  { %v737_v17 = vpop.f32.mrf.mxu0 }
 0x174   :  { %602 = vst.msk [vmem:[%s1345_s4 + $0x8] sm:$0xff] %vm600_vm0, %v737_v17 }
 0x175   :  { %v441_v22 = vpop.f32.mrf.mxu0 }
 0x176   :  { %601 = vst.msk [vmem:[%s1345_s4] sm:$0xff] %vm600_vm0, %v441_v22 }
 0x177   :  { %v761_v25 = vpop.f32.mrf.mxu1 }
 0x178   :  { %618 = vst.msk [vmem:[%s1345_s4 + $0x88] sm:$0xff] %vm600_vm0, %v761_v25 }
 0x179   :  { %v521_v21 = vpop.f32.mrf.mxu1 }
 0x17a   :  { %617 = vst.msk [vmem:[%s1345_s4 + $0x80] sm:$0xff] %vm600_vm0, %v521_v21 }
 0x17d   :  { %v764_v50 = vpop.f32.mrf.mxu1 }
 0x17e   :  { %v740_v1 = vpop.f32.mrf.mxu0  ;;  %620 = vst.msk [vmem:[%s1345_s4 + $0x98] sm:$0xff] %vm600_vm0, %v764_v50 }
 0x17f   :  { %604 = vst.msk [vmem:[%s1345_s4 + $0x18] sm:$0xff] %vm600_vm0, %v740_v1  ;;  %v531_v53 = vpop.f32.mrf.mxu1 }
 0x180   :  { %v451_v54 = vpop.f32.mrf.mxu0  ;;  %619 = vst.msk [vmem:[%s1345_s4 + $0x90] sm:$0xff] %vm600_vm0, %v531_v53 }
 0x181   :  { %603 = vst.msk [vmem:[%s1345_s4 + $0x10] sm:$0xff] %vm600_vm0, %v451_v54 }
 0x185   :  { %v767_v55 = vpop.f32.mrf.mxu1 }
 0x186   :  { %v743_v58 = vpop.f32.mrf.mxu0  ;;  %622 = vst.msk [vmem:[%s1345_s4 + $0xa8] sm:$0xff] %vm600_vm0, %v767_v55 }
 0x187   :  { %606 = vst.msk [vmem:[%s1345_s4 + $0x28] sm:$0xff] %vm600_vm0, %v743_v58  ;;  %v541_v59 = vpop.f32.mrf.mxu1 }
 0x188   :  { %v461_v18 = vpop.f32.mrf.mxu0  ;;  %621 = vst.msk [vmem:[%s1345_s4 + $0xa0] sm:$0xff] %vm600_vm0, %v541_v59 }
 0x189   :  { %605 = vst.msk [vmem:[%s1345_s4 + $0x20] sm:$0xff] %vm600_vm0, %v461_v18 }
 0x18d   :  { %v770_v40 = vpop.f32.mrf.mxu1 }
 0x18e   :  { %v746_v60 = vpop.f32.mrf.mxu0  ;;  %624 = vst.msk [vmem:[%s1345_s4 + $0xb8] sm:$0xff] %vm600_vm0, %v770_v40 }
 0x18f   :  { %608 = vst.msk [vmem:[%s1345_s4 + $0x38] sm:$0xff] %vm600_vm0, %v746_v60  ;;  %v551_v41 = vpop.f32.mrf.mxu1 }
 0x190   :  { %v471_v19 = vpop.f32.mrf.mxu0  ;;  %623 = vst.msk [vmem:[%s1345_s4 + $0xb0] sm:$0xff] %vm600_vm0, %v551_v41 }
 0x191   :  { %607 = vst.msk [vmem:[%s1345_s4 + $0x30] sm:$0xff] %vm600_vm0, %v471_v19 }
 0x195   :  { %v773_v61 = vpop.f32.mrf.mxu1 }
 0x196   :  { %v749_v3 = vpop.f32.mrf.mxu0  ;;  %626 = vst.msk [vmem:[%s1345_s4 + $0xc8] sm:$0xff] %vm600_vm0, %v773_v61 }
 0x197   :  { %610 = vst.msk [vmem:[%s1345_s4 + $0x48] sm:$0xff] %vm600_vm0, %v749_v3  ;;  %v561_v2 = vpop.f32.mrf.mxu1 }
 0x198   :  { %v481_v4 = vpop.f32.mrf.mxu0  ;;  %625 = vst.msk [vmem:[%s1345_s4 + $0xc0] sm:$0xff] %vm600_vm0, %v561_v2 }
 0x199   :  { %609 = vst.msk [vmem:[%s1345_s4 + $0x40] sm:$0xff] %vm600_vm0, %v481_v4 }
 0x19d   :  { %v776_v5 = vpop.f32.mrf.mxu1 }
 0x19e   :  { %v752_v6 = vpop.f32.mrf.mxu0  ;;  %628 = vst.msk [vmem:[%s1345_s4 + $0xd8] sm:$0xff] %vm600_vm0, %v776_v5 }
 0x19f   :  { %612 = vst.msk [vmem:[%s1345_s4 + $0x58] sm:$0xff] %vm600_vm0, %v752_v6  ;;  %v571_v11 = vpop.f32.mrf.mxu1 }
 0x1a0   :  { %v491_v14 = vpop.f32.mrf.mxu0  ;;  %627 = vst.msk [vmem:[%s1345_s4 + $0xd0] sm:$0xff] %vm600_vm0, %v571_v11 }
 0x1a1   :  { %611 = vst.msk [vmem:[%s1345_s4 + $0x50] sm:$0xff] %vm600_vm0, %v491_v14 }
 0x1a5   :  { %v779_v45 = vpop.f32.mrf.mxu1 }
 0x1a6   :  { %v755_v15 = vpop.f32.mrf.mxu0  ;;  %630 = vst.msk [vmem:[%s1345_s4 + $0xe8] sm:$0xff] %vm600_vm0, %v779_v45 }
 0x1a7   :  { %614 = vst.msk [vmem:[%s1345_s4 + $0x68] sm:$0xff] %vm600_vm0, %v755_v15  ;;  %v581_v46 = vpop.f32.mrf.mxu1 }
 0x1a8   :  { %v501_v23 = vpop.f32.mrf.mxu0  ;;  %629 = vst.msk [vmem:[%s1345_s4 + $0xe0] sm:$0xff] %vm600_vm0, %v581_v46 }
 0x1a9   :  { %613 = vst.msk [vmem:[%s1345_s4 + $0x60] sm:$0xff] %vm600_vm0, %v501_v23 }
 0x1ad   :  { %v782_v20 = vpop.f32.mrf.mxu1 }
 0x1ae   :  { %v758_v24 = vpop.f32.mrf.mxu0  ;;  %632 = vst.msk [vmem:[%s1345_s4 + $0xf8] sm:$0xff] %vm600_vm0, %v782_v20 }
 0x1af   :  { %616 = vst.msk [vmem:[%s1345_s4 + $0x78] sm:$0xff] %vm600_vm0, %v758_v24  ;;  %v591_v26 = vpop.f32.mrf.mxu1 }
 0x1b0   :  { %v511_v27 = vpop.f32.mrf.mxu0  ;;  %631 = vst.msk [vmem:[%s1345_s4 + $0xf0] sm:$0xff] %vm600_vm0, %v591_v26 }
 0x1b1   :  { %615 = vst.msk [vmem:[%s1345_s4 + $0x70] sm:$0xff] %vm600_vm0, %v511_v27 }
 0x1b2   :  { %925 = dma.done.wait [#allocation4], 4096  }
 0x1b3   :  { %926 = vsyncadd [#allocation4], 4294963200 }
 0x1b4   :  { %652 = vsyncpa [#allocation3], 1 }
 0x1b5   :  { %653 = vsyncpa [#allocation4], 1 }

</bundles_post_ra>
